<compile_context>
chip_gen: v7x
topology: tpu7x:2x2x1
jax: 0.10.0
libtpu: 0.0.40
codegen_flags: <defaults>
</compile_context>

<pallas_src>
import jax
import jax.numpy as jnp
from jax import lax
from jax.experimental import pallas as pl
from jax.experimental.pallas import tpu as pltpu

# ---- module hyper-params (small synthetic sizes) ----------------------------
DIM = 32          # feature dimension ("dim" in Moco.__init__)
K_QUEUE = 64      # queue size ("K")
M_MOM = 0.999     # momentum ("m")
TEMP = 0.07       # softmax temperature ("T")

N_BATCH = 8
C_IN, H_IN, W_IN = 4, 8, 8
FEAT = C_IN * H_IN * W_IN          # 256

LOGITS_PAD = 128                   # lane-dense logits width (>= 1 + K_QUEUE)
QUEUE_PAD = 128                    # lane-dense padded queue width (>= 1 + K_QUEUE)
assert LOGITS_PAD >= 1 + K_QUEUE and QUEUE_PAD >= 1 + K_QUEUE
assert (FEAT * DIM) % 128 == 0
W_ROWS = (FEAT * DIM) // 128       # 64: rows of the lane-dense (W_ROWS,128) weight view


# =============================================================================
# Fused kernel: momentum update + both encoders + L2 normalize + logits.
# =============================================================================
def _moco_fused_kernel(x_ref, w_ref, bq_ref, bk_ref, wq128_ref, wk128_ref, queue_ref,
                       logits_ref, k_ref, wk_new_ref, bk_new_ref):
    # ---- single fused encoder matmul: (2N, FEAT) @ (FEAT, 2*DIM) -----------
    feats = jnp.dot(x_ref[...], w_ref[...],
                    preferred_element_type=jnp.float32)          # (2N, 2*DIM)

    bq = bq_ref[...]
    bk_new = bk_ref[...] * M_MOM + bq * (1.0 - M_MOM)
    bk_new_ref[...] = bk_new

    # query branch: feat_q = xq @ wq + bq
    feat_q = feats[:N_BATCH, :DIM] + bq                          # (N, DIM)
    # key branch via momentum linearity:
    #   xk @ (m*wk + (1-m)*wq) = m*(xk@wk) + (1-m)*(xk@wq)
    feat_k = (M_MOM * feats[N_BATCH:, DIM:]
              + (1.0 - M_MOM) * feats[N_BATCH:, :DIM]) + bk_new  # (N, DIM)

    # ---- lane-dense momentum update of the key encoder weights -------------
    wk_new_ref[...] = wk128_ref[...] * M_MOM + wq128_ref[...] * (1.0 - M_MOM)

    # ---- L2 normalization scales (torch F.normalize, eps=1e-12) ------------
    inv_q = lax.rsqrt(jnp.maximum(
        jnp.sum(feat_q * feat_q, axis=1, keepdims=True), 1e-24))  # (N, 1)
    inv_k = lax.rsqrt(jnp.maximum(
        jnp.sum(feat_k * feat_k, axis=1, keepdims=True), 1e-24))  # (N, 1)
    k_ref[...] = feat_k * inv_k                                   # normalized keys

    # ---- contrastive logits --------------------------------------------------
    # Queue is a (DIM, 128) slab: col 0 zero, cols 1..K hold the (dim,K) buffer.
    # Matmul on RAW feat_q (scale deferred) so the MXU never waits on the EUP.
    l_neg_raw = jnp.dot(feat_q, queue_ref[...],
                        preferred_element_type=jnp.float32)       # (N, 128)
    l_pos_raw = jnp.sum(feat_q * feat_k, axis=1, keepdims=True)   # (N, 1)

    inv_t = 1.0 / TEMP
    l_pos = l_pos_raw * (inv_q * inv_k * inv_t)                   # (N, 1)
    scale_neg = inv_q * inv_t                                     # (N, 1)

    lane = lax.broadcasted_iota(jnp.int32, (N_BATCH, LOGITS_PAD), 1)
    # Single unmasked lane-dense (N,128) store; wrapper slices first 1+K cols.
    logits_ref[...] = jnp.where(lane == 0, l_pos, l_neg_raw * scale_neg)


def _moco_fused(x_cat, w_cat, bq, bk, wq128, wk128, queue_pad):
    n2, f = x_cat.shape
    n = n2 // 2
    full2d = lambda i: (0, 0)
    return pl.pallas_call(
        _moco_fused_kernel,
        out_shape=(
            jax.ShapeDtypeStruct((n, LOGITS_PAD), jnp.float32),   # padded logits
            jax.ShapeDtypeStruct((n, DIM), jnp.float32),          # k (for enqueue)
            jax.ShapeDtypeStruct((W_ROWS, 128), jnp.float32),     # wk_new (lane-dense view)
            jax.ShapeDtypeStruct((1, DIM), jnp.float32),          # bk_new
        ),
        grid=(1,),
        in_specs=[
            pl.BlockSpec((n2, f), full2d),              # x_cat  = [xq; xk]
            pl.BlockSpec((f, 2 * DIM), full2d),         # w_cat  = [wq, wk]
            pl.BlockSpec((1, DIM), full2d),             # bq
            pl.BlockSpec((1, DIM), full2d),             # bk
            pl.BlockSpec((W_ROWS, 128), full2d),        # wq (lane-dense view)
            pl.BlockSpec((W_ROWS, 128), full2d),        # wk (lane-dense view)
            pl.BlockSpec((DIM, QUEUE_PAD), full2d),     # padded queue (dim, 128)
        ],
        out_specs=(
            pl.BlockSpec((n, LOGITS_PAD), full2d),
            pl.BlockSpec((n, DIM), full2d),
            pl.BlockSpec((W_ROWS, 128), full2d),
            pl.BlockSpec((1, DIM), full2d),
        ),
        compiler_params=pltpu.CompilerParams(
            dimension_semantics=("arbitrary",)),
    )(x_cat, w_cat, bq, bk, wq128, wk128, queue_pad)


# =============================================================================
# Full MoCo forward (functional: returns logits/labels plus updated state)
# =============================================================================
def moco_forward(params, state, im_q, im_k):
    wq, bq, wk, bk = params["wq"], params["bq"], params["wk"], params["bk"]
    queue_pad, ptr = state["queue"], state["ptr"]   # queue_pad: (DIM, 128)
    n = im_q.shape[0]
    assert K_QUEUE % n == 0  # mirrors assert in _dequeue_and_enqueue

    xq = im_q.reshape(n, -1)   # NCHW -> (N, C*H*W)
    xk = im_k.reshape(n, -1)
    x_cat = jnp.concatenate([xq, xk], axis=0)       # (2N, FEAT)
    w_cat = jnp.concatenate([wq, wk], axis=1)       # (FEAT, 2*DIM)
    wq128 = wq.reshape(W_ROWS, 128)                 # contiguous lane-dense views
    wk128 = wk.reshape(W_ROWS, 128)

    logits_pad, k, wk_new128, bk_new = _moco_fused(
        x_cat, w_cat, bq, bk, wq128, wk128, queue_pad)

    logits = logits_pad[:, :1 + K_QUEUE]
    labels = jnp.zeros((n,), dtype=jnp.int32)
    wk_new = wk_new128.reshape(FEAT, DIM)

    # dequeue & enqueue: queue[:, ptr:ptr+n] = k.T   (queue cols 1..K hold data,
    # col 0 is the reserved l_pos lane).  The kernel read the OLD queue above.
    queue_new = lax.dynamic_update_slice(
        queue_pad, k.T, (jnp.int32(0), 1 + ptr[0]))
    ptr_new = jnp.mod(ptr + n, K_QUEUE).astype(jnp.int32)

    new_params = dict(params, wk=wk_new, bk=bk_new)
    new_state = dict(queue=queue_new, ptr=ptr_new)
    return (logits, labels), new_params, new_state


moco_forward_jit = jax.jit(moco_forward)


# ---- plain-JAX reference (mirrors the PyTorch forward) ----------------------
def _reference(params, state, im_q, im_k):
    wq, bq, wk, bk = params["wq"], params["bq"], params["wk"], params["bk"]
    queue_dk = state["queue"][:, 1:1 + K_QUEUE]     # (dim, K)
    n = im_q.shape[0]
    xq = im_q.reshape(n, -1)
    xk = im_k.reshape(n, -1)
    wk_new = wk * M_MOM + wq * (1.0 - M_MOM)
    bk_new = bk * M_MOM + bq * (1.0 - M_MOM)
    q = xq @ wq + bq
    q = q / jnp.maximum(jnp.linalg.norm(q, axis=1, keepdims=True), 1e-12)
    k = xk @ wk_new + bk_new
    k = k / jnp.maximum(jnp.linalg.norm(k, axis=1, keepdims=True), 1e-12)
    l_pos = jnp.sum(q * k, axis=1, keepdims=True)
    l_neg = q @ queue_dk
    logits = jnp.concatenate([l_pos, l_neg], axis=1) / TEMP
    return logits, k, wk_new, bk_new


# =============================================================================
if __name__ == "__main__":
    root = jax.random.PRNGKey(0)
    k_w, k_b, k_queue, k_imq, k_imk = jax.random.split(root, 5)

    # synthetic base_encoder params; encoder_k starts as a copy of encoder_q
    wq = 0.02 * jax.random.normal(k_w, (FEAT, DIM), jnp.float32)
    bq = 0.01 * jax.random.normal(k_b, (1, DIM), jnp.float32)
    params = {"wq": wq, "bq": bq, "wk": wq, "bk": bq}

    # queue buffer: torch.randn(dim, K) then F.normalize(queue, 0)
    # NOTE: in the reference, 0 is passed POSITIONALLY, i.e. p=0 (count of
    # nonzeros) along the default dim=1 (the K axis).  With randn the nonzero
    # count is a.s. K, so each row is divided by K.  Reproduced literally.
    queue_dk = jax.random.normal(k_queue, (DIM, K_QUEUE), jnp.float32)
    nz = jnp.sum((queue_dk != 0.0).astype(jnp.float32), axis=1, keepdims=True)
    queue_dk = queue_dk / jnp.maximum(nz, 1e-12)
    # lane-dense padded slab: col 0 reserved (l_pos lane), cols 1..K = queue
    queue_pad = jnp.zeros((DIM, QUEUE_PAD), jnp.float32).at[:, 1:1 + K_QUEUE].set(queue_dk)
    state = {"queue": queue_pad, "ptr": jnp.zeros((1,), jnp.int32)}

    im_q = jax.random.normal(k_imq, (N_BATCH, C_IN, H_IN, W_IN), jnp.float32)
    im_k = jax.random.normal(k_imk, (N_BATCH, C_IN, H_IN, W_IN), jnp.float32)

    (logits, labels), new_params, new_state = moco_forward_jit(
        params, state, im_q, im_k)
    jax.block_until_ready((logits, labels, new_params, new_state))

    # shape / sanity checks
    assert logits.shape == (N_BATCH, 1 + K_QUEUE)
    assert labels.shape == (N_BATCH,)
    assert new_state["queue"].shape == (DIM, QUEUE_PAD)
    assert new_params["wk"].shape == (FEAT, DIM)
    assert bool(jnp.all(jnp.isfinite(logits)))
    assert bool(jnp.all(jnp.isfinite(new_state["queue"])))

    # numerical check against the plain-JAX reference of the PyTorch forward
    logits_ref, k_ref, wk_ref, bk_ref = _reference(params, state, im_q, im_k)
    assert bool(jnp.allclose(logits, logits_ref, rtol=1e-3, atol=1e-4))
    assert bool(jnp.allclose(new_params["wk"], wk_ref, rtol=1e-5, atol=1e-7))
    assert bool(jnp.allclose(new_params["bk"], bk_ref, rtol=1e-5, atol=1e-7))
    assert bool(jnp.allclose(
        new_state["queue"][:, 1:1 + N_BATCH], k_ref.T, rtol=1e-3, atol=1e-5))

    print("KERNEL_OK")
</pallas_src>

<mosaic_0001>
module attributes {stable_mosaic.version = 11 : i64} {
  func.func @_moco_fused_kernel(%arg0: i32, %arg1: memref<16x256xf32, #tpu.memory_space<vmem>>, %arg2: memref<256x64xf32, #tpu.memory_space<vmem>>, %arg3: memref<1x32xf32, #tpu.memory_space<vmem>>, %arg4: memref<1x32xf32, #tpu.memory_space<vmem>>, %arg5: memref<64x128xf32, #tpu.memory_space<vmem>>, %arg6: memref<64x128xf32, #tpu.memory_space<vmem>>, %arg7: memref<32x128xf32, #tpu.memory_space<vmem>>, %arg8: memref<8x128xf32, #tpu.memory_space<vmem>>, %arg9: memref<8x32xf32, #tpu.memory_space<vmem>>, %arg10: memref<64x128xf32, #tpu.memory_space<vmem>>, %arg11: memref<1x32xf32, #tpu.memory_space<vmem>>) attributes {dimension_semantics = [#tpu.dimension_semantics<arbitrary>], iteration_bounds = array<i64: 1>, scalar_prefetch = 0 : i64, scratch_operands = 0 : i64, tpu.core_type = #tpu.core_type<tc>, window_params = [{pipeline_mode = #tpu.pipeline_mode<synchronous>, transform_indices = @transform_0, window_bounds = array<i64: 16, 256>}, {pipeline_mode = #tpu.pipeline_mode<synchronous>, transform_indices = @transform_1, window_bounds = array<i64: 256, 64>}, {pipeline_mode = #tpu.pipeline_mode<synchronous>, transform_indices = @transform_2, window_bounds = array<i64: 1, 32>}, {pipeline_mode = #tpu.pipeline_mode<synchronous>, transform_indices = @transform_3, window_bounds = array<i64: 1, 32>}, {pipeline_mode = #tpu.pipeline_mode<synchronous>, transform_indices = @transform_4, window_bounds = array<i64: 64, 128>}, {pipeline_mode = #tpu.pipeline_mode<synchronous>, transform_indices = @transform_5, window_bounds = array<i64: 64, 128>}, {pipeline_mode = #tpu.pipeline_mode<synchronous>, transform_indices = @transform_6, window_bounds = array<i64: 32, 128>}, {pipeline_mode = #tpu.pipeline_mode<synchronous>, transform_indices = @transform_7, window_bounds = array<i64: 8, 128>}, {pipeline_mode = #tpu.pipeline_mode<synchronous>, transform_indices = @transform_8, window_bounds = array<i64: 8, 32>}, {pipeline_mode = #tpu.pipeline_mode<synchronous>, transform_indices = @transform_9, window_bounds = array<i64: 64, 128>}, {pipeline_mode = #tpu.pipeline_mode<synchronous>, transform_indices = @transform_10, window_bounds = array<i64: 1, 32>}]} {
    %c0 = arith.constant 0 : index
    %c0_0 = arith.constant 0 : index
    %0 = vector.load %arg1[%c0, %c0_0] : memref<16x256xf32, #tpu.memory_space<vmem>>, vector<16x256xf32>
    %c0_1 = arith.constant 0 : index
    %c0_2 = arith.constant 0 : index
    %1 = vector.load %arg2[%c0_1, %c0_2] : memref<256x64xf32, #tpu.memory_space<vmem>>, vector<256x64xf32>
    %cst = arith.constant dense<0.000000e+00> : vector<16x64xf32>
    %2 = tpu.matmul %0, %1, %cst {dimension_numbers = #tpu.dot_dimension_numbers<[1], [0], [0], [1], [0, 0, 1, 1], [], []>} : vector<16x256xf32>, vector<256x64xf32>, vector<16x64xf32> -> vector<16x64xf32>
    %c0_3 = arith.constant 0 : index
    %c0_4 = arith.constant 0 : index
    %3 = vector.load %arg3[%c0_3, %c0_4] : memref<1x32xf32, #tpu.memory_space<vmem>>, vector<1x32xf32>
    %c0_5 = arith.constant 0 : index
    %c0_6 = arith.constant 0 : index
    %4 = vector.load %arg4[%c0_5, %c0_6] : memref<1x32xf32, #tpu.memory_space<vmem>>, vector<1x32xf32>
    %cst_7 = arith.constant 9.990000e-01 : f32
    %5 = vector.broadcast %cst_7 : f32 to vector<1x32xf32>
    %6 = arith.mulf %4, %5 : vector<1x32xf32>
    %cst_8 = arith.constant 1.000000e-03 : f32
    %7 = vector.broadcast %cst_8 : f32 to vector<1x32xf32>
    %8 = arith.mulf %3, %7 : vector<1x32xf32>
    %9 = arith.addf %6, %8 : vector<1x32xf32>
    %c0_9 = arith.constant 0 : index
    %c0_10 = arith.constant 0 : index
    %10 = vector.load %arg11[%c0_9, %c0_10] : memref<1x32xf32, #tpu.memory_space<vmem>>, vector<1x32xf32>
    tpu.vector_store %arg11[%c0_9, %c0_10], %9 {strides = array<i32>} : memref<1x32xf32, #tpu.memory_space<vmem>>, vector<1x32xf32>,
    %11 = vector.extract_strided_slice %2 {offsets = [0, 0], sizes = [8, 32], strides = [1, 1]} : vector<16x64xf32> to vector<8x32xf32>
    %12 = vector.broadcast %3 : vector<1x32xf32> to vector<8x32xf32>
    %13 = arith.addf %11, %12 : vector<8x32xf32>
    %14 = vector.extract_strided_slice %2 {offsets = [8, 32], sizes = [8, 32], strides = [1, 1]} : vector<16x64xf32> to vector<8x32xf32>
    %cst_11 = arith.constant 9.990000e-01 : f32
    %15 = vector.broadcast %cst_11 : f32 to vector<8x32xf32>
    %16 = arith.mulf %15, %14 : vector<8x32xf32>
    %17 = vector.extract_strided_slice %2 {offsets = [8, 0], sizes = [8, 32], strides = [1, 1]} : vector<16x64xf32> to vector<8x32xf32>
    %cst_12 = arith.constant 1.000000e-03 : f32
    %18 = vector.broadcast %cst_12 : f32 to vector<8x32xf32>
    %19 = arith.mulf %18, %17 : vector<8x32xf32>
    %20 = arith.addf %16, %19 : vector<8x32xf32>
    %21 = vector.broadcast %9 : vector<1x32xf32> to vector<8x32xf32>
    %22 = arith.addf %20, %21 : vector<8x32xf32>
    %c0_13 = arith.constant 0 : index
    %c0_14 = arith.constant 0 : index
    %23 = vector.load %arg6[%c0_13, %c0_14] : memref<64x128xf32, #tpu.memory_space<vmem>>, vector<64x128xf32>
    %cst_15 = arith.constant 9.990000e-01 : f32
    %24 = vector.broadcast %cst_15 : f32 to vector<64x128xf32>
    %25 = arith.mulf %23, %24 : vector<64x128xf32>
    %c0_16 = arith.constant 0 : index
    %c0_17 = arith.constant 0 : index
    %26 = vector.load %arg5[%c0_16, %c0_17] : memref<64x128xf32, #tpu.memory_space<vmem>>, vector<64x128xf32>
    %cst_18 = arith.constant 1.000000e-03 : f32
    %27 = vector.broadcast %cst_18 : f32 to vector<64x128xf32>
    %28 = arith.mulf %26, %27 : vector<64x128xf32>
    %29 = arith.addf %25, %28 : vector<64x128xf32>
    %c0_19 = arith.constant 0 : index
    %c0_20 = arith.constant 0 : index
    %30 = vector.load %arg10[%c0_19, %c0_20] : memref<64x128xf32, #tpu.memory_space<vmem>>, vector<64x128xf32>
    tpu.vector_store %arg10[%c0_19, %c0_20], %29 {strides = array<i32>} : memref<64x128xf32, #tpu.memory_space<vmem>>, vector<64x128xf32>,
    %31 = arith.mulf %13, %13 : vector<8x32xf32>
    %cst_21 = arith.constant dense<0.000000e+00> : vector<8xf32>
    %32 = vector.multi_reduction <add>, %31, %cst_21 [1] : vector<8x32xf32> to vector<8xf32>
    %33 = vector.shape_cast %32 : vector<8xf32> to vector<8x1xf32>
    %cst_22 = arith.constant 1.000000e-24 : f32
    %34 = vector.broadcast %cst_22 : f32 to vector<8x1xf32>
    %35 = arith.maximumf %33, %34 : vector<8x1xf32>
    %36 = math.rsqrt %35 : vector<8x1xf32>
    %37 = arith.mulf %22, %22 : vector<8x32xf32>
    %cst_23 = arith.constant dense<0.000000e+00> : vector<8xf32>
    %38 = vector.multi_reduction <add>, %37, %cst_23 [1] : vector<8x32xf32> to vector<8xf32>
    %39 = vector.shape_cast %38 : vector<8xf32> to vector<8x1xf32>
    %cst_24 = arith.constant 1.000000e-24 : f32
    %40 = vector.broadcast %cst_24 : f32 to vector<8x1xf32>
    %41 = arith.maximumf %39, %40 : vector<8x1xf32>
    %42 = math.rsqrt %41 : vector<8x1xf32>
    %43 = vector.broadcast %42 : vector<8x1xf32> to vector<8x32xf32>
    %44 = arith.mulf %22, %43 : vector<8x32xf32>
    %c0_25 = arith.constant 0 : index
    %c0_26 = arith.constant 0 : index
    %45 = vector.load %arg9[%c0_25, %c0_26] : memref<8x32xf32, #tpu.memory_space<vmem>>, vector<8x32xf32>
    tpu.vector_store %arg9[%c0_25, %c0_26], %44 {strides = array<i32>} : memref<8x32xf32, #tpu.memory_space<vmem>>, vector<8x32xf32>,
    %c0_27 = arith.constant 0 : index
    %c0_28 = arith.constant 0 : index
    %46 = vector.load %arg7[%c0_27, %c0_28] : memref<32x128xf32, #tpu.memory_space<vmem>>, vector<32x128xf32>
    %cst_29 = arith.constant dense<0.000000e+00> : vector<8x128xf32>
    %47 = tpu.matmul %13, %46, %cst_29 {dimension_numbers = #tpu.dot_dimension_numbers<[1], [0], [0], [1], [0, 0, 1, 1], [], []>} : vector<8x32xf32>, vector<32x128xf32>, vector<8x128xf32> -> vector<8x128xf32>
    %48 = arith.mulf %13, %22 : vector<8x32xf32>
    %cst_30 = arith.constant dense<0.000000e+00> : vector<8xf32>
    %49 = vector.multi_reduction <add>, %48, %cst_30 [1] : vector<8x32xf32> to vector<8xf32>
    %50 = vector.shape_cast %49 : vector<8xf32> to vector<8x1xf32>
    %51 = arith.mulf %36, %42 : vector<8x1xf32>
    %cst_31 = arith.constant 14.2857141 : f32
    %52 = vector.broadcast %cst_31 : f32 to vector<8x1xf32>
    %53 = arith.mulf %51, %52 : vector<8x1xf32>
    %54 = arith.mulf %50, %53 : vector<8x1xf32>
    %cst_32 = arith.constant 14.2857141 : f32
    %55 = vector.broadcast %cst_32 : f32 to vector<8x1xf32>
    %56 = arith.mulf %36, %55 : vector<8x1xf32>
    %57 = tpu.iota {dimensions = array<i32: 1>} : vector<8x128xi32>
    %c0_i32 = arith.constant 0 : i32
    %58 = vector.broadcast %c0_i32 : i32 to vector<8x128xi32>
    %59 = arith.cmpi eq, %57, %58 : vector<8x128xi32>
    %60 = vector.broadcast %56 : vector<8x1xf32> to vector<8x128xf32>
    %61 = arith.mulf %47, %60 : vector<8x128xf32>
    %62 = vector.shape_cast %54 : vector<8x1xf32> to vector<8x1xf32>
    %63 = vector.broadcast %62 : vector<8x1xf32> to vector<8x128xf32>
    %64 = arith.select %59, %63, %61 : vector<8x128xi1>, vector<8x128xf32>
    %c0_33 = arith.constant 0 : index
    %c0_34 = arith.constant 0 : index
    %65 = vector.load %arg8[%c0_33, %c0_34] : memref<8x128xf32, #tpu.memory_space<vmem>>, vector<8x128xf32>
    tpu.vector_store %arg8[%c0_33, %c0_34], %64 {strides = array<i32>} : memref<8x128xf32, #tpu.memory_space<vmem>>, vector<8x128xf32>,
    return
  }
  func.func @transform_0(%arg0: i32) -> (i32, i32) {
    %c0_i32 = arith.constant 0 : i32
    %c0_i32_0 = arith.constant 0 : i32
    %c0_i32_1 = arith.constant 0 : i32
    return %c0_i32, %c0_i32_0 : i32, i32
  }
  func.func @transform_1(%arg0: i32) -> (i32, i32) {
    %c0_i32 = arith.constant 0 : i32
    %c0_i32_0 = arith.constant 0 : i32
    %c0_i32_1 = arith.constant 0 : i32
    return %c0_i32, %c0_i32_0 : i32, i32
  }
  func.func @transform_2(%arg0: i32) -> (i32, i32) {
    %c0_i32 = arith.constant 0 : i32
    %c0_i32_0 = arith.constant 0 : i32
    %c0_i32_1 = arith.constant 0 : i32
    return %c0_i32, %c0_i32_0 : i32, i32
  }
  func.func @transform_3(%arg0: i32) -> (i32, i32) {
    %c0_i32 = arith.constant 0 : i32
    %c0_i32_0 = arith.constant 0 : i32
    %c0_i32_1 = arith.constant 0 : i32
    return %c0_i32, %c0_i32_0 : i32, i32
  }
  func.func @transform_4(%arg0: i32) -> (i32, i32) {
    %c0_i32 = arith.constant 0 : i32
    %c0_i32_0 = arith.constant 0 : i32
    %c0_i32_1 = arith.constant 0 : i32
    return %c0_i32, %c0_i32_0 : i32, i32
  }
  func.func @transform_5(%arg0: i32) -> (i32, i32) {
    %c0_i32 = arith.constant 0 : i32
    %c0_i32_0 = arith.constant 0 : i32
    %c0_i32_1 = arith.constant 0 : i32
    return %c0_i32, %c0_i32_0 : i32, i32
  }
  func.func @transform_6(%arg0: i32) -> (i32, i32) {
    %c0_i32 = arith.constant 0 : i32
    %c0_i32_0 = arith.constant 0 : i32
    %c0_i32_1 = arith.constant 0 : i32
    return %c0_i32, %c0_i32_0 : i32, i32
  }
  func.func @transform_7(%arg0: i32) -> (i32, i32) {
    %c0_i32 = arith.constant 0 : i32
    %c0_i32_0 = arith.constant 0 : i32
    %c0_i32_1 = arith.constant 0 : i32
    return %c0_i32, %c0_i32_0 : i32, i32
  }
  func.func @transform_8(%arg0: i32) -> (i32, i32) {
    %c0_i32 = arith.constant 0 : i32
    %c0_i32_0 = arith.constant 0 : i32
    %c0_i32_1 = arith.constant 0 : i32
    return %c0_i32, %c0_i32_0 : i32, i32
  }
  func.func @transform_9(%arg0: i32) -> (i32, i32) {
    %c0_i32 = arith.constant 0 : i32
    %c0_i32_0 = arith.constant 0 : i32
    %c0_i32_1 = arith.constant 0 : i32
    return %c0_i32, %c0_i32_0 : i32, i32
  }
  func.func @transform_10(%arg0: i32) -> (i32, i32) {
    %c0_i32 = arith.constant 0 : i32
    %c0_i32_0 = arith.constant 0 : i32
    %c0_i32_1 = arith.constant 0 : i32
    return %c0_i32, %c0_i32_0 : i32, i32
  }
}

</mosaic_0001>

<bundles_post_ra>
// kernel: moco_forward.1
= control target key start
LH: loop header
LB: loop body
LE: loop exit
PB: predicated region body
PF: predicated region fallthrough
CT: control target
= control target key end

     0   :  { %16 = vsyncpa [#allocation3], 0  ;;  %v527_v7 = vmov 0.0|0.0   ;;  %s826_s0 = inlined_call_operand.vmem [shape: f32[16,256], index: 0, kind: input, shape index: {}]   ;;  %s827_s1 = inlined_call_operand.vmem [shape: f32[256,64], index: 1, kind: input, shape index: {}]   ;;  %s828_s2 = inlined_call_operand.vmem [shape: f32[1,32], index: 2, kind: input, shape index: {}]   ;;  %s829_s3 = inlined_call_operand.vmem [shape: f32[1,32], index: 3, kind: input, shape index: {}]   ;;  %s830_s4 = inlined_call_operand.vmem [shape: f32[64,128], index: 4, kind: input, shape index: {}]   ;;  %s831_s5 = inlined_call_operand.vmem [shape: f32[64,128], index: 5, kind: input, shape index: {}]   ;;  %s832_s6 = inlined_call_operand.vmem [shape: f32[32,128], index: 6, kind: input, shape index: {}]   ;;  %s833_s7 = inlined_call_operand.hbm [shape: f32[8,128], index: 7, kind: output, shape index: {0}]   ;;  %s834_s8 = inlined_call_operand.vmem [shape: f32[8,32], index: 8, kind: output, shape index: {1}]   ;;  %s835_s9 = inlined_call_operand.vmem [shape: f32[64,128], index: 9, kind: output, shape index: {2}]   ;;  %s836_s10 = inlined_call_operand.hbm [shape: f32[1,32], index: 10, kind: output, shape index: {3}]  }
   0x1   :  { %v52_v0 = vld [vmem:[%s827_s1 + $0x80] sm:$0xff]  ;;  %v53_v1 = vld [vmem:[%s827_s1 + $0x88] sm:$0xff]  ;;  %v54_v5 = vld [vmem:[%s827_s1 + $0x90] sm:$0xff]  ;;  %462 = vmatprep.subr.bf16.mxu1 %v527_v7 }
   0x2   :  { %v36_v2 = vld [vmem:[%s827_s1] sm:$0xff]  ;;  %v430_v3 = vpack.c.bf16 %v53_v1, %v52_v0  ;;  %v37_v4 = vld [vmem:[%s827_s1 + $0x8] sm:$0xff]  ;;  %v55_v6 = vld [vmem:[%s827_s1 + $0x98] sm:$0xff] }
   0x3   :  { %v432_v8 = vpack.c.bf16 %v37_v4, %v36_v2  ;;  %v434_v9 = vpack.c.bf16 %v55_v6, %v54_v5  ;;  %v38_v10 = vld [vmem:[%s827_s1 + $0x10] sm:$0xff]  ;;  %v39_v11 = vld [vmem:[%s827_s1 + $0x18] sm:$0xff]  ;;  %v56_v12 = vld [vmem:[%s827_s1 + $0xa0] sm:$0xff] }
   0x4   :  { %431 = vmatprep.subr.bf16.mxu0 %v430_v3  ;;  %v57_v13 = vld [vmem:[%s827_s1 + $0xa8] sm:$0xff]  ;;  %v436_v14 = vpack.c.bf16 %v39_v11, %v38_v10  ;;  %v40_v16 = vld [vmem:[%s827_s1 + $0x20] sm:$0xff]  ;;  %v58_v18 = vld [vmem:[%s827_s1 + $0xb0] sm:$0xff] }
   0x5   :  { %433 = vmatpush3.bf16.msra.mxu0 %v432_v8  ;;  %v438_v15 = vpack.c.bf16 %v57_v13, %v56_v12  ;;  %v41_v17 = vld [vmem:[%s827_s1 + $0x28] sm:$0xff]  ;;  %v59_v19 = vld [vmem:[%s827_s1 + $0xb8] sm:$0xff]  ;;  %v42_v22 = vld [vmem:[%s827_s1 + $0x30] sm:$0xff] }
   0x6   :  { %435 = vmatprep.subr.bf16.mxu0 %v434_v9  ;;  %v440_v20 = vpack.c.bf16 %v41_v17, %v40_v16  ;;  %v442_v21 = vpack.c.bf16 %v59_v19, %v58_v18  ;;  %v43_v23 = vld [vmem:[%s827_s1 + $0x38] sm:$0xff]  ;;  %v60_v24 = vld [vmem:[%s827_s1 + $0xc0] sm:$0xff]  ;;  %v61_v25 = vld [vmem:[%s827_s1 + $0xc8] sm:$0xff] }
   0x7   :  { %v33_v26 = vld [vmem:[%s826_s0 + $0x8] sm:$0xff]  ;;  %v44_v27 = vld [vmem:[%s827_s1 + $0x40] sm:$0xff]  ;;  %v444_v29 = vpack.c.bf16 %v43_v23, %v42_v22  ;;  %v62_v30 = vld [vmem:[%s827_s1 + $0xd0] sm:$0xff]  ;;  %v446_v35 = vpack.c.bf16 %v61_v25, %v60_v24 }
   0x8   :  { %v45_v28 = vld [vmem:[%s827_s1 + $0x48] sm:$0xff]  ;;  %132 = vmatprep.mubr.f32.mxu0 %v33_v26  ;;  %v63_v31 = vld [vmem:[%s827_s1 + $0xd8] sm:$0xff]  ;;  %v173_v32 = vld [vmem:[%s831_s5] sm:$0xff] }
   0x9   :  { %437 = vmatpush3.bf16.msra.mxu0 %v436_v14  ;;  %v174_v33 = vld [vmem:[%s831_s5 + $0x8] sm:$0xff]  ;;  %v175_v34 = vld [vmem:[%s831_s5 + $0x10] sm:$0xff]  ;;  %v47_v37 = vld [vmem:[%s827_s1 + $0x58] sm:$0xff]  ;;  %v181_v41 = vmul.f32 0.999, %v173_v32  ;;  %v448_v49 = vpack.c.bf16 %v45_v28, %v44_v27  ;;  %v450_v56 = vpack.c.bf16 %v63_v31, %v62_v30 }
   0xa   :  { %439 = vmatprep.subr.bf16.mxu0 %v438_v15  ;;  %v46_v36 = vld [vmem:[%s827_s1 + $0x50] sm:$0xff]  ;;  %v176_v38 = vld [vmem:[%s831_s5 + $0x18] sm:$0xff]  ;;  %v177_v39 = vld [vmem:[%s831_s5 + $0x20] sm:$0xff]  ;;  %v182_v44 = vmul.f32 0.999, %v174_v33 }
   0xb   :  { %v178_v40 = vld [vmem:[%s831_s5 + $0x28] sm:$0xff]  ;;  %v179_v42 = vld [vmem:[%s831_s5 + $0x30] sm:$0xff]  ;;  %v180_v43 = vld [vmem:[%s831_s5 + $0x38] sm:$0xff]  ;;  %v183_v45 = vmul.f32 0.999, %v175_v34  ;;  %v452_v61 = vpack.c.bf16 %v47_v37, %v46_v36 }
   0xc   :  { %v184_v46 = vmul.f32 0.999, %v176_v38  ;;  %v185_v47 = vmul.f32 0.999, %v177_v39  ;;  %v186_v48 = vmul.f32 0.999, %v178_v40 }
   0xd   :  { %441 = vmatpush3.bf16.msra.mxu0 %v440_v20  ;;  %v64_v50 = vld [vmem:[%s827_s1 + $0xe0] sm:$0xff]  ;;  %v65_v51 = vld [vmem:[%s827_s1 + $0xe8] sm:$0xff]  ;;  %v187_v52 = vmul.f32 0.999, %v179_v42  ;;  %v188_v53 = vmul.f32 0.999, %v180_v43 }
   0xe   :  { %443 = vmatprep.subr.bf16.mxu0 %v442_v21  ;;  %v189_v54 = vld [vmem:[%s830_s4] sm:$0xff]  ;;  %v190_v55 = vld [vmem:[%s830_s4 + $0x8] sm:$0xff]  ;;  %v191_v57 = vld [vmem:[%s830_s4 + $0x10] sm:$0xff]  ;;  %v454_v13 = vpack.c.bf16 %v65_v51, %v64_v50 }
   0xf   :  { %v192_v58 = vld [vmem:[%s830_s4 + $0x18] sm:$0xff]  ;;  %v193_v59 = vld [vmem:[%s830_s4 + $0x20] sm:$0xff]  ;;  %v197_v60 = vmul.f32 0.001, %v189_v54  ;;  %v194_v62 = vld [vmem:[%s830_s4 + $0x28] sm:$0xff] }
  0x10   :  { %v195_v63 = vld [vmem:[%s830_s4 + $0x30] sm:$0xff]  ;;  %v196_v0 = vld [vmem:[%s830_s4 + $0x38] sm:$0xff]  ;;  %v198_v1 = vmul.f32 0.001, %v190_v55  ;;  %v48_v2 = vld [vmem:[%s827_s1 + $0x60] sm:$0xff] }
  0x11   :  { %445 = vmatpush3.bf16.msra.mxu0 %v444_v29  ;;  %v49_v3 = vld [vmem:[%s827_s1 + $0x68] sm:$0xff]  ;;  %v199_v4 = vmul.f32 0.001, %v191_v57  ;;  %v200_v5 = vmul.f32 0.001, %v192_v58  ;;  %v205_v8 = vadd.f32 %v197_v60, %v181_v41  ;;  %v244_v17 = vld [vmem:[%s832_s6] sm:$0xff] }
  0x12   :  { %447 = vmatprep.subr.bf16.mxu0 %v446_v35  ;;  %v201_v6 = vmul.f32 0.001, %v193_v59  ;;  %v202_v9 = vmul.f32 0.001, %v194_v62  ;;  %v203_v10 = vmul.f32 0.001, %v195_v63  ;;  %v206_v12 = vadd.f32 %v198_v1, %v182_v44 }
  0x13   :  { %v204_v11 = vmul.f32 0.001, %v196_v0  ;;  %v207_v14 = vadd.f32 %v199_v4, %v183_v45  ;;  %v208_v15 = vadd.f32 %v200_v5, %v184_v46  ;;  %213 = vst [vmem:[%s835_s9] sm:$0xff] %v205_v8  ;;  %v245_v18 = vld [vmem:[%s832_s6 + $0x8] sm:$0xff] }
  0x14   :  { %v209_v16 = vadd.f32 %v201_v6, %v185_v47 }
  0x15   :  { %449 = vmatpush3.bf16.msra.mxu0 %v448_v49 }
  0x16   :  { %451 = vmatprep.subr.bf16.mxu0 %v450_v56 }
  0x17   :  { %17 = vsyncpa [#allocation5], 0  ;;  %v66_v19 = vld [vmem:[%s827_s1 + $0xf0] sm:$0xff]  ;;  %v67_v20 = vld [vmem:[%s827_s1 + $0xf8] sm:$0xff]  ;;  %v210_v21 = vadd.f32 %v202_v9, %v186_v48  ;;  %v211_v22 = vadd.f32 %v203_v10, %v187_v52  ;;  %v212_v23 = vadd.f32 %v204_v11, %v188_v53  ;;  %214 = vst [vmem:[%s835_s9 + $0x8] sm:$0xff] %v206_v12  ;;  %v463_v24 = vpack.c.bf16 %v245_v18, %v244_v17 }
  0x18   :  { %215 = vst [vmem:[%s835_s9 + $0x10] sm:$0xff] %v207_v14  ;;  %216 = vst [vmem:[%s835_s9 + $0x18] sm:$0xff] %v208_v15  ;;  %v456_v25 = vpack.c.bf16 %v49_v3, %v48_v2  ;;  %v458_v26 = vpack.c.bf16 %v67_v20, %v66_v19  ;;  %v50_v27 = vld [vmem:[%s827_s1 + $0x70] sm:$0xff]  ;;  %v51_v28 = vld [vmem:[%s827_s1 + $0x78] sm:$0xff]  ;;  %vm528_vm0 = vmmov 0   ;;  %v529_v35 = vmov 0.0  }
  0x19   :  { %217 = vst [vmem:[%s835_s9 + $0x20] sm:$0xff] %v209_v16  ;;  %453 = vmatpush3.bf16.msra.mxu0 %v452_v61  ;;  %218 = vst [vmem:[%s835_s9 + $0x28] sm:$0xff] %v210_v21  ;;  %464 = vmatpush3.bf16.msra.mxu1 %v463_v24  ;;  %v460_v29 = vpack.c.bf16 %v51_v28, %v50_v27  ;;  %v32_v30 = vld [vmem:[%s826_s0] sm:$0xff]  ;;  %v35_v31 = vld [vmem:[%s826_s0 + $0x18] sm:$0xff]  ;;  %v151_v36 = vlaneseq  ;;  %vm222_vm1 = vcmask 261120   ;;  %vm148_vm2 = vcmask 253952  }
  0x1a   :  { %219 = vst [vmem:[%s835_s9 + $0x30] sm:$0xff] %v211_v22  ;;  %220 = vst [vmem:[%s835_s9 + $0x38] sm:$0xff] %v212_v23  ;;  %455 = vmatprep.subr.bf16.mxu0 %v454_v13  ;;  %465 = vmatprep.subr.bf16.mxu1 %v527_v7  ;;  %v34_v32 = vld [vmem:[%s826_s0 + $0x10] sm:$0xff]  ;;  %v247_v33 = vld [vmem:[%s832_s6 + $0x18] sm:$0xff] }
  0x1b   :  { %v246_v7 = vld [vmem:[%s832_s6 + $0x10] sm:$0xff]  ;;  %427 = vmatprep.mubr.msk.f32.mxu1 %vm528_vm0, %v529_v35  ;;  %v152_v37 = vshrl.u32 %v151_v36, 7  ;;  %v143_v39 = vld [vmem:[%s828_s2] sm:$0x1]  ;;  %s530_s2 = smov 32   ;;  %s532_s6 = smov [#allocation4]  }
  0x1c   :  { %v466_v34 = vpack.c.bf16 %v247_v33, %v246_v7  ;;  %v144_v40 = vld [vmem:[%s829_s3] sm:$0x1]  ;;  %v146_v45 = vmul.f32 0.001, %v143_v39  ;;  %s531_s3 = smov 96   ;;  %s359_s17 = sshll.u32 %s532_s6, 4  ;;  %s360_s17 = int_to_ptr.vmem [resolvable:$true] %s359_s17 }
  0x1d   :  { %457 = vmatpush3.bf16.msra.mxu0 %v456_v25  ;;  %v153_v38 = vsub.s32 0, %v152_v37  ;;  %v145_v46 = vmul.f32 0.999, %v144_v40  ;;  %s479_s18 = scalar_lea.vmem %s360_s17, 16  ;;  %s483_s19 = scalar_lea.vmem %s360_s17, 32 }
  0x1e   :  { %459 = vmatprep.subr.bf16.mxu0 %v458_v26  ;;  %467 = vmatpush3.bf16.msra.mxu1 %v466_v34  ;;  %p480_p0 = scmp.ne.s32.totalorder %s360_s17, %s479_s18  ;;  %p484_p1 = scmp.lt.s32.totalorder %s360_s17, %s360_s17 }
  0x1f   :  { %v154_v42 = vrot.slane %v143_v39, %v153_v38  ;;  %v147_v51 = vadd.f32 %v146_v45, %v145_v46  ;;  %p485_p2 = scmp.lt.s32.totalorder %s483_s19, %s479_s18 }
  0x21   :  { %461 = vmatpush3.bf16.msra.mxu0 %v460_v29  ;;  %v168_v53 = vrot.slane %v147_v51, %v153_v38  ;;  %149 = vst.msk [vmem:[#allocation4] sm:$0x1] %vm148_vm2, %v147_v51  ;;  %p486_p3 = por %p485_p2, %p484_p1 }
  0x23   :  { %p487_p4 = pnand %p486_p3, %p480_p0 }
  0x24   :  { %133 = vmatmul.mubr.f32.vlgmr.msra.gmra.mrb[0].mxu0 %v32_v30 }
  0x25   :  { %137 = vmatprep.mubr.f32.mxu0 %v35_v31 }
  0x28   :  { %138 = vmatmul.mubr.f32.gmra.mrb[2].mxu0 %v34_v32 }
  0xf7   :  { %v408_v41 = vpop.f32.mrb[0].mxu0 }
  0xf8   :  { %v409_v43 = vpop.f32.mrb[1].mxu0 }
  0xf9   :  { %v410_v44 = vadd.f32 %v409_v43, %v408_v41 }
  0xfb   :  { %v156_v47 = vadd.f32 %v410_v44, %v154_v42  ;;  %v411_v48 = vpop.f32.mrb[2].mxu0 }
  0xfc   :  { %v412_v49 = vpop.f32.mrb[3].mxu0 }
  0xfd   :  { %v413_v50 = vadd.f32 %v412_v49, %v411_v48  ;;  %428 = vmatmul.mubr.msk.f32.vlgmr.msra.gmra.mrb[0].mxu1 %vm222_vm1, %v156_v47  ;;  %v221_v60 = vmul.f32 %v156_v47, %v156_v47 }
  0xff   :  { %v158_v52 = vmul.f32 0.001, %v413_v50  ;;  %v157_v55 = vmul.f32 0.999, %v413_v50  ;;  %v223_v61 = vsel %vm222_vm1, %v221_v60, 0.0 }
 0x101   :  { %160 = vrot.lane.b32.xlu0 %v158_v52, %s530_s2 }
 0x105   :  { %169 = vrot.lane.b32.xlu0 %v168_v53, %s530_s2 }
 0x173   :  { %v161_v54 = vpop.permute.xlu0 %160 }
 0x174   :  { %v163_v56 = vadd.f32 %v161_v54, %v157_v55 }
 0x177   :  { %v170_v57 = vpop.permute.xlu0 %169 }
 0x178   :  { %v172_v58 = vadd.f32 %v170_v57, %v163_v56 }
 0x17a   :  { %322 = vrot.lane.b32.xlu0 %v172_v58, %s531_s3  ;;  %v228_v59 = vmul.f32 %v172_v58, %v172_v58 }
 0x17c   :  { %230 = vrot.lane.b32.xlu1 %v228_v59, %s531_s3 }
 0x199   :  { %224 = vadd.xlane.f32.xlu0 %v223_v61 }
 0x1d0   :  { %v317_v62 = vpop.f32.mrb[0].mxu1 }
 0x1d1   :  { %v429_v63 = vpop.f32.mrb[1].mxu1 }
 0x1ec   :  { %v323_v0 = vpop.permute.xlu0 %322 }
 0x1ed   :  { %v325_v2 = vmul.f32 %v323_v0, %v156_v47 }
 0x1ee   :  { %v231_v1 = vpop.permute.xlu1 %230 }
 0x1ef   :  { %v233_v3 = vsel %vm222_vm1, %v231_v1, 0.0  ;;  %v326_v4 = vsel %vm222_vm1, %v325_v2, 0.0 }
 0x1f0   :  { %234 = vadd.xlane.f32.xlu1 %v233_v3 }
 0x1f4   :  { %327 = vadd.xlane.f32.xlu1 %v326_v4 }
 0x226   :  { %v225_v5 = vpop.xlane.xlu0 %224 }
 0x227   :  { %v226_v6 = vmax.f32 %v225_v5, 1e-24 }
 0x229   :  { %475 = vrsqrt.f32 %v226_v6 }
 0x27d   :  { %v235_v8 = vpop.xlane.xlu1 %234 }
 0x27e   :  { %v236_v9 = vmax.f32 %v235_v8, 1e-24 }
 0x280   :  { %477 = vrsqrt.f32 %v236_v9 }
 0x281   :  { %490 = shalt.err (!%p487_p4)
}
 0x282   :  { %s491_s4 = scalar_lea.hbm %s836_s10, 16 }
 0x283   :  { %p492_p5 = scmp.ne.s32.totalorder %s836_s10, %s491_s4  ;;  %p495_p6 = scmp.lt.u32.totalorder %s491_s4, %s836_s10 }
 0x285   :  { %p497_p7 = pnand %p495_p6, %p492_p5 }
 0x287   :  { %500 = shalt.err (!%p497_p7)
}
 0x288   :  { %362 = dma.vmem_to_hbm [thread:$0]  %s360_s17, 16, %s836_s10, [#allocation5]   ;;  %v476_v10 = vpop.eup %475  ;;  %v334_v12 = vand.u32 127, %v151_v36  ;;  %v328_v17 = vpop.xlane.xlu1 %327 }
 0x289   :  { %v332_v15 = vmul.f32 14.285714, %v476_v10  ;;  %s533_s27 = smov [#allocation2]  }
 0x28a   :  { %v478_v11 = vpop.eup %477  ;;  %s345_s9 = sshll.u32 %s533_s27, 4  ;;  %vm335_vm3 = vcmp.eq.s32.totalorder %v334_v12, 0  ;;  %s346_s9 = int_to_ptr.vmem [resolvable:$true] %s345_s9 }
 0x28b   :  { %v329_v13 = vmul.f32 %v478_v11, %v476_v10  ;;  %v238_v14 = vmul.f32 %v478_v11, %v172_v58  ;;  %v336_v19 = vmul.f32 %v332_v15, %v317_v62  ;;  %s501_s10 = scalar_lea.vmem %s346_s9, 128  ;;  %p506_p9 = scmp.lt.s32.totalorder %s346_s9, %s346_s9 }
 0x28c   :  { %p502_p8 = scmp.ne.s32.totalorder %s346_s9, %s501_s10  ;;  %p507_p10 = scmp.lt.s32.totalorder %s501_s10, %s501_s10 }
 0x28d   :  { %v330_v16 = vmul.f32 14.285714, %v329_v13  ;;  %240 = vrot.lane.b32.xlu0 %v238_v14, %s531_s3 }
 0x28e   :  { %p508_p11 = por %p507_p10, %p506_p9 }
 0x28f   :  { %v331_v18 = vmul.f32 %v330_v16, %v328_v17 }
 0x290   :  { %p509_p12 = pnand %p508_p11, %p502_p8 }
 0x291   :  { %v337_v20 = vsel %vm335_vm3, %v331_v18, %v336_v19 }
 0x292   :  { %338 = vst [vmem:[#allocation2] sm:$0xff] %v337_v20 }
 0x293   :  { %512 = shalt.err (!%p509_p12)
}
 0x294   :  { %s513_s30 = scalar_lea.hbm %s833_s7, 128 }
 0x295   :  { %p514_p13 = scmp.ne.s32.totalorder %s833_s7, %s513_s30  ;;  %p517_p0 = scmp.lt.u32.totalorder %s513_s30, %s833_s7 }
 0x297   :  { %p519_p1 = pnand %p517_p0, %p514_p13 }
 0x299   :  { %522 = shalt.err (!%p519_p1)
}
 0x29a   :  { %348 = dma.vmem_to_hbm [thread:$0]  %s346_s9, 128, %s833_s7, [#allocation3]  }
 0x2ff   :  { %v241_v21 = vpop.permute.xlu0 %240 }
 0x300   :  { %243 = vst.msk [vmem:[%s834_s8] sm:$0xff] %vm222_vm1, %v241_v21 }
 0x301   :  { %523 = dma.done.wait [#allocation3], 128  }
 0x302   :  { %524 = vsyncadd [#allocation3], 4294967168 }
 0x303   :  { %525 = dma.done.wait [#allocation5], 16  }
 0x304   :  { %526 = vsyncadd [#allocation5], 4294967280 }
 0x305   :  { %373 = vsyncpa [#allocation3], 1 }
 0x306   :  { %374 = vsyncpa [#allocation5], 1 }

</bundles_post_ra>
